<compile_context>
chip_gen: v7x
topology: tpu7x:2x2x1
jax: 0.10.0
libtpu: 0.0.40
codegen_flags: <defaults>
</compile_context>

<pallas_src>
import jax
import jax.numpy as jnp
from jax import lax
from jax.experimental import pallas as pl
from jax.experimental.pallas import tpu as pltpu

_LANE = 128
_SUBLANE = 8


def _round_up(x, m):
    return ((x + m - 1) // m) * m


def _proto_mlp_kernel(ids_ref, table_ref, w1t_ref, b1_ref, w2t_ref, b2_ref,
                      out_ref):
    """One grid step = one block of `tn` output rows.

    ids_ref   : VMEM i32 [tn, 1]     class id per row
    table_ref : VMEM f32 [Cp, Fp]    embedding table   (resident across grid)
    w1t_ref   : VMEM f32 [Fp, Hp]    W1 transposed to [in, out] (resident)
    b1_ref    : VMEM f32 [1, Hp]
    w2t_ref   : VMEM f32 [Hp, Fp]    W2 transposed to [in, out] (resident)
    b2_ref    : VMEM f32 [1, Fp]
    out_ref   : VMEM f32 [tn, Fp]    lane-dense output block
    """
    ids = ids_ref[...]                                        # (tn, 1) i32
    tn = ids.shape[0]
    cp = table_ref.shape[0]

    # One-hot MXU gather: rows of the table selected by a (tn, Cp) one-hot.
    classes = lax.broadcasted_iota(jnp.int32, (tn, cp), 1)    # (tn, Cp)
    onehot = (ids == classes).astype(jnp.float32)             # (tn, Cp)
    x = jnp.dot(onehot, table_ref[...],
                preferred_element_type=jnp.float32)           # (tn, Fp)

    # Linear(F -> H) + ReLU; weights already in [in, out] layout -> plain dot.
    h = jnp.dot(x, w1t_ref[...], preferred_element_type=jnp.float32)  # (tn, Hp)
    h = jnp.maximum(h + b1_ref[...], jnp.float32(0.0))        # f32 VPU epilogue

    # Linear(H -> F).
    y = jnp.dot(h, w2t_ref[...], preferred_element_type=jnp.float32)  # (tn, Fp)
    out_ref[...] = (y + b2_ref[...]).astype(out_ref.dtype)


def prepare_proto_params(emb_table, w1, b1, w2, b2):
    """One-time param prep: transpose to [in,out] and zero-pad to lane-dense dims.

    emb_table: f32 [num_classes, feature_dim]
    w1: f32 [server_hidden_dim, feature_dim], b1: f32 [server_hidden_dim]
    w2: f32 [feature_dim, server_hidden_dim], b2: f32 [feature_dim]
    """
    f32 = jnp.float32
    C, F = emb_table.shape
    H = w1.shape[0]
    Cp = _round_up(C, _SUBLANE)
    Fp = _round_up(F, _LANE)
    Hp = _round_up(H, _LANE)

    table_p = jnp.zeros((Cp, Fp), f32).at[:C, :F].set(emb_table.astype(f32))
    w1t_p = jnp.zeros((Fp, Hp), f32).at[:F, :H].set(w1.astype(f32).T)
    b1_p = jnp.zeros((1, Hp), f32).at[0, :H].set(b1.astype(f32))
    w2t_p = jnp.zeros((Hp, Fp), f32).at[:H, :F].set(w2.astype(f32).T)
    b2_p = jnp.zeros((1, Fp), f32).at[0, :F].set(b2.astype(f32))

    return dict(num_classes=C, feature_dim=F, hidden_dim=H,
                table=table_p, w1t=w1t_p, b1=b1_p, w2t=w2t_p, b2=b2_p)


def trainable_prototypes_forward(class_id, params, *, max_tile=256):
    """JAX wrapper mirroring Trainable_prototypes.forward.

    class_id: int [N];  params: output of prepare_proto_params.
    returns:  f32 [N, feature_dim]
    """
    table, w1t, b1, w2t, b2 = (params["table"], params["w1t"], params["b1"],
                               params["w2t"], params["b2"])
    C, F = params["num_classes"], params["feature_dim"]
    Cp, Fp = table.shape
    Hp = w1t.shape[1]

    ids = jnp.asarray(class_id, dtype=jnp.int32).reshape(-1)
    ids = jnp.clip(ids, 0, C - 1)      # match jnp.take clamping for untrusted ids
    n = ids.shape[0]

    # Row tiling: single step for small N; 256-row parallel blocks for large N.
    n8 = _round_up(n, _SUBLANE)
    if n8 <= max_tile:
        tn = n8
        n_pad = n8
    else:
        tn = max_tile
        n_pad = _round_up(n, tn)

    ids_p = jnp.zeros((n_pad, 1), jnp.int32).at[:n, 0].set(ids)
    grid = (n_pad // tn,)

    # Raise the scoped-VMEM limit only when the resident footprint would blow
    # past the v5e 16 MiB default; cap at 64 MiB (v7x physical per-TC VMEM).
    resident_bytes = 4 * (table.size + w1t.size + b1.size + w2t.size + b2.size)
    per_step_bytes = 4 * tn * (Fp + _LANE)          # out block + ids block (lane-padded)
    vmem_estimate = 2 * resident_bytes + 4 * per_step_bytes
    vmem_limit = None
    if vmem_estimate > (12 << 20):
        vmem_limit = int(min(vmem_estimate + (4 << 20), 64 << 20))

    out = pl.pallas_call(
        _proto_mlp_kernel,
        out_shape=jax.ShapeDtypeStruct((n_pad, Fp), jnp.float32),
        grid=grid,
        in_specs=[
            pl.BlockSpec((tn, 1), lambda i: (i, 0)),     # class ids (streamed)
            pl.BlockSpec((Cp, Fp), lambda i: (0, 0)),    # emb table (resident)
            pl.BlockSpec((Fp, Hp), lambda i: (0, 0)),    # W1^T [in,out] (resident)
            pl.BlockSpec((1, Hp), lambda i: (0, 0)),     # b1
            pl.BlockSpec((Hp, Fp), lambda i: (0, 0)),    # W2^T [in,out] (resident)
            pl.BlockSpec((1, Fp), lambda i: (0, 0)),     # b2
        ],
        out_specs=pl.BlockSpec((tn, Fp), lambda i: (i, 0)),
        compiler_params=pltpu.CompilerParams(
            dimension_semantics=("parallel",),           # shard row blocks on v7x
            vmem_limit_bytes=vmem_limit),
    )(ids_p, table, w1t, b1, w2t, b2)

    return out[:n, :F]


def _init_params(key, num_classes, server_hidden_dim, feature_dim):
    """Deterministic synthetic parameters matching the PyTorch module shapes."""
    k_emb, k_w1, k_b1, k_w2, k_b2 = jax.random.split(key, 5)
    emb_table = jax.random.normal(k_emb, (num_classes, feature_dim), jnp.float32)
    lim1 = 1.0 / jnp.sqrt(jnp.float32(feature_dim))
    w1 = jax.random.uniform(k_w1, (server_hidden_dim, feature_dim), jnp.float32,
                            -lim1, lim1)
    b1 = jax.random.uniform(k_b1, (server_hidden_dim,), jnp.float32, -lim1, lim1)
    lim2 = 1.0 / jnp.sqrt(jnp.float32(server_hidden_dim))
    w2 = jax.random.uniform(k_w2, (feature_dim, server_hidden_dim), jnp.float32,
                            -lim2, lim2)
    b2 = jax.random.uniform(k_b2, (feature_dim,), jnp.float32, -lim2, lim2)
    return emb_table, w1, b1, w2, b2


def _reference_forward(class_id, emb_table, w1, b1, w2, b2):
    emb = jnp.take(emb_table, jnp.asarray(class_id, jnp.int32), axis=0)
    mid = jnp.maximum(emb @ w1.T + b1, 0.0)
    return mid @ w2.T + b2


if __name__ == "__main__":
    num_classes = 10
    feature_dim = 32
    server_hidden_dim = 64

    key = jax.random.PRNGKey(0)
    k_params, k_ids1, k_ids2 = jax.random.split(key, 3)
    emb_table, w1, b1, w2, b2 = _init_params(
        k_params, num_classes, server_hidden_dim, feature_dim)

    params = prepare_proto_params(emb_table, w1, b1, w2, b2)

    # Native FL-server-size case: N=10 (not a multiple of 8 -> padding path,
    # single grid step).
    class_id = jax.random.randint(k_ids1, (10,), 0, num_classes, dtype=jnp.int32)
    out = jax.block_until_ready(
        trainable_prototypes_forward(class_id, params))
    ref = _reference_forward(class_id, emb_table, w1, b1, w2, b2)
    assert out.shape == (class_id.shape[0], feature_dim)
    assert jnp.allclose(out, ref, atol=1e-4, rtol=1e-4)

    # Larger batch: exercises the tiled multi-step (parallel) grid path.
    class_id2 = jax.random.randint(k_ids2, (300,), 0, num_classes, dtype=jnp.int32)
    out2 = jax.block_until_ready(
        trainable_prototypes_forward(class_id2, params))
    ref2 = _reference_forward(class_id2, emb_table, w1, b1, w2, b2)
    assert out2.shape == (class_id2.shape[0], feature_dim)
    assert jnp.allclose(out2, ref2, atol=1e-4, rtol=1e-4)

    print("KERNEL_OK")
</pallas_src>

<mosaic_0001>
module attributes {stable_mosaic.version = 11 : i64} {
  func.func @_proto_mlp_kernel(%arg0: i32, %arg1: memref<16x1xi32, #tpu.memory_space<vmem>>, %arg2: memref<16x128xf32, #tpu.memory_space<vmem>>, %arg3: memref<128x128xf32, #tpu.memory_space<vmem>>, %arg4: memref<1x128xf32, #tpu.memory_space<vmem>>, %arg5: memref<128x128xf32, #tpu.memory_space<vmem>>, %arg6: memref<1x128xf32, #tpu.memory_space<vmem>>, %arg7: memref<16x128xf32, #tpu.memory_space<vmem>>) attributes {dimension_semantics = [#tpu.dimension_semantics<parallel>], iteration_bounds = array<i64: 1>, scalar_prefetch = 0 : i64, scratch_operands = 0 : i64, tpu.core_type = #tpu.core_type<tc>, window_params = [{transform_indices = @transform_0, window_bounds = array<i64: 16, 1>}, {pipeline_mode = #tpu.pipeline_mode<synchronous>, transform_indices = @transform_1, window_bounds = array<i64: 16, 128>}, {pipeline_mode = #tpu.pipeline_mode<synchronous>, transform_indices = @transform_2, window_bounds = array<i64: 128, 128>}, {pipeline_mode = #tpu.pipeline_mode<synchronous>, transform_indices = @transform_3, window_bounds = array<i64: 1, 128>}, {pipeline_mode = #tpu.pipeline_mode<synchronous>, transform_indices = @transform_4, window_bounds = array<i64: 128, 128>}, {pipeline_mode = #tpu.pipeline_mode<synchronous>, transform_indices = @transform_5, window_bounds = array<i64: 1, 128>}, {transform_indices = @transform_6, window_bounds = array<i64: 16, 128>}]} {
    %c0 = arith.constant 0 : index
    %c0_0 = arith.constant 0 : index
    %0 = vector.load %arg1[%c0, %c0_0] : memref<16x1xi32, #tpu.memory_space<vmem>>, vector<16x1xi32>
    %1 = tpu.iota {dimensions = array<i32: 1>} : vector<16x16xi32>
    %2 = vector.broadcast %0 : vector<16x1xi32> to vector<16x16xi32>
    %3 = arith.cmpi eq, %2, %1 : vector<16x16xi32>
    %4 = arith.extui %3 : vector<16x16xi1> to vector<16x16xi32>
    %5 = arith.sitofp %4 : vector<16x16xi32> to vector<16x16xf32>
    %c0_1 = arith.constant 0 : index
    %c0_2 = arith.constant 0 : index
    %6 = vector.load %arg2[%c0_1, %c0_2] : memref<16x128xf32, #tpu.memory_space<vmem>>, vector<16x128xf32>
    %cst = arith.constant dense<0.000000e+00> : vector<16x128xf32>
    %7 = tpu.matmul %5, %6, %cst {dimension_numbers = #tpu.dot_dimension_numbers<[1], [0], [0], [1], [0, 0, 1, 1], [], []>} : vector<16x16xf32>, vector<16x128xf32>, vector<16x128xf32> -> vector<16x128xf32>
    %c0_3 = arith.constant 0 : index
    %c0_4 = arith.constant 0 : index
    %8 = vector.load %arg3[%c0_3, %c0_4] : memref<128x128xf32, #tpu.memory_space<vmem>>, vector<128x128xf32>
    %cst_5 = arith.constant dense<0.000000e+00> : vector<16x128xf32>
    %9 = tpu.matmul %7, %8, %cst_5 {dimension_numbers = #tpu.dot_dimension_numbers<[1], [0], [0], [1], [0, 0, 1, 1], [], []>} : vector<16x128xf32>, vector<128x128xf32>, vector<16x128xf32> -> vector<16x128xf32>
    %c0_6 = arith.constant 0 : index
    %c0_7 = arith.constant 0 : index
    %10 = vector.load %arg4[%c0_6, %c0_7] : memref<1x128xf32, #tpu.memory_space<vmem>>, vector<1x128xf32>
    %11 = vector.broadcast %10 : vector<1x128xf32> to vector<16x128xf32>
    %12 = arith.addf %9, %11 : vector<16x128xf32>
    %cst_8 = arith.constant 0.000000e+00 : f32
    %13 = vector.broadcast %cst_8 : f32 to vector<16x128xf32>
    %14 = arith.maximumf %12, %13 : vector<16x128xf32>
    %c0_9 = arith.constant 0 : index
    %c0_10 = arith.constant 0 : index
    %15 = vector.load %arg5[%c0_9, %c0_10] : memref<128x128xf32, #tpu.memory_space<vmem>>, vector<128x128xf32>
    %cst_11 = arith.constant dense<0.000000e+00> : vector<16x128xf32>
    %16 = tpu.matmul %14, %15, %cst_11 {dimension_numbers = #tpu.dot_dimension_numbers<[1], [0], [0], [1], [0, 0, 1, 1], [], []>} : vector<16x128xf32>, vector<128x128xf32>, vector<16x128xf32> -> vector<16x128xf32>
    %c0_12 = arith.constant 0 : index
    %c0_13 = arith.constant 0 : index
    %17 = vector.load %arg6[%c0_12, %c0_13] : memref<1x128xf32, #tpu.memory_space<vmem>>, vector<1x128xf32>
    %18 = vector.broadcast %17 : vector<1x128xf32> to vector<16x128xf32>
    %19 = arith.addf %16, %18 : vector<16x128xf32>
    %c0_14 = arith.constant 0 : index
    %c0_15 = arith.constant 0 : index
    %20 = vector.load %arg7[%c0_14, %c0_15] : memref<16x128xf32, #tpu.memory_space<vmem>>, vector<16x128xf32>
    tpu.vector_store %arg7[%c0_14, %c0_15], %19 {strides = array<i32>} : memref<16x128xf32, #tpu.memory_space<vmem>>, vector<16x128xf32>,
    return
  }
  func.func @transform_0(%arg0: i32) -> (i32, i32) {
    %c0_i32 = arith.constant 0 : i32
    %c0_i32_0 = arith.constant 0 : i32
    return %arg0, %c0_i32 : i32, i32
  }
  func.func @transform_1(%arg0: i32) -> (i32, i32) {
    %c0_i32 = arith.constant 0 : i32
    %c0_i32_0 = arith.constant 0 : i32
    %c0_i32_1 = arith.constant 0 : i32
    return %c0_i32, %c0_i32_0 : i32, i32
  }
  func.func @transform_2(%arg0: i32) -> (i32, i32) {
    %c0_i32 = arith.constant 0 : i32
    %c0_i32_0 = arith.constant 0 : i32
    %c0_i32_1 = arith.constant 0 : i32
    return %c0_i32, %c0_i32_0 : i32, i32
  }
  func.func @transform_3(%arg0: i32) -> (i32, i32) {
    %c0_i32 = arith.constant 0 : i32
    %c0_i32_0 = arith.constant 0 : i32
    %c0_i32_1 = arith.constant 0 : i32
    return %c0_i32, %c0_i32_0 : i32, i32
  }
  func.func @transform_4(%arg0: i32) -> (i32, i32) {
    %c0_i32 = arith.constant 0 : i32
    %c0_i32_0 = arith.constant 0 : i32
    %c0_i32_1 = arith.constant 0 : i32
    return %c0_i32, %c0_i32_0 : i32, i32
  }
  func.func @transform_5(%arg0: i32) -> (i32, i32) {
    %c0_i32 = arith.constant 0 : i32
    %c0_i32_0 = arith.constant 0 : i32
    %c0_i32_1 = arith.constant 0 : i32
    return %c0_i32, %c0_i32_0 : i32, i32
  }
  func.func @transform_6(%arg0: i32) -> (i32, i32) {
    %c0_i32 = arith.constant 0 : i32
    %c0_i32_0 = arith.constant 0 : i32
    return %arg0, %c0_i32 : i32, i32
  }
}

</mosaic_0001>

<bundles_post_ra>
// kernel: tpu_custom_call.1
= control target key start
LH: loop header
LB: loop body
LE: loop exit
PB: predicated region body
PF: predicated region fallthrough
CT: control target
= control target key end

     0   :  { %11 = vsyncpa [#allocation3], 0  ;;  %s746_s0 = inlined_call_operand.vmem [shape: s32[16,1], index: 0, kind: input, shape index: {}]   ;;  %s747_s1 = inlined_call_operand.vmem [shape: f32[16,128], index: 1, kind: input, shape index: {}]   ;;  %s748_s2 = inlined_call_operand.hbm [shape: f32[128,128], index: 2, kind: input, shape index: {}]   ;;  %s749_s3 = inlined_call_operand.vmem [shape: f32[1,128], index: 3, kind: input, shape index: {}]   ;;  %s750_s4 = inlined_call_operand.hbm [shape: f32[128,128], index: 4, kind: input, shape index: {}]   ;;  %s751_s5 = inlined_call_operand.vmem [shape: f32[1,128], index: 5, kind: input, shape index: {}]   ;;  %s752_s6 = inlined_call_operand.hbm [shape: f32[16,128], index: 6, kind: output, shape index: {}]  }
   0x1   :  { %12 = vsyncpa [#allocation6], 0 }
   0x2   :  { %13 = vsyncpa [#allocation4], 0  ;;  %s641_s21 = smov [#allocation2]   ;;  %s569_s25 = scalar_lea.hbm %s748_s2, 2048 }
   0x3   :  { %s23_s22 = sshll.u32 %s641_s21, 4  ;;  %p570_p0 = scmp.ne.s32.totalorder %s748_s2, %s569_s25  ;;  %s24_s22 = int_to_ptr.vmem [resolvable:$true] %s23_s22 }
   0x4   :  { %p573_p1 = scmp.lt.u32.totalorder %s569_s25, %s748_s2 }
   0x6   :  { %p575_p2 = pnand %p573_p1, %p570_p0 }
   0x8   :  { %578 = shalt.err (!%p575_p2)
}
   0x9   :  { %s579_s30 = scalar_lea.vmem %s24_s22, 2048  ;;  %p584_p4 = scmp.lt.s32.totalorder %s24_s22, %s24_s22 }
   0xa   :  { %p580_p3 = scmp.ne.s32.totalorder %s24_s22, %s579_s30  ;;  %p585_p5 = scmp.lt.s32.totalorder %s579_s30, %s579_s30 }
   0xc   :  { %p586_p6 = por %p585_p5, %p584_p4 }
   0xe   :  { %p587_p7 = pnand %p586_p6, %p580_p3 }
  0x10   :  { %590 = shalt.err (!%p587_p7)
}
  0x11   :  { %s642_s7 = smov 128   ;;  %s643_s8 = smov 8  }
  0x12   :  { %29 = dma.hbm_to_vmem [thread:$0]  %s748_s2, 2048, %s24_s22, [#allocation3], %s642_s7, %s642_s7, %s643_s8  }
  0x13   :  { %s644_s11 = smov [#allocation5]   ;;  %s591_s15 = scalar_lea.hbm %s750_s4, 2048 }
  0x14   :  { %s37_s12 = sshll.u32 %s644_s11, 4  ;;  %p592_p8 = scmp.ne.s32.totalorder %s750_s4, %s591_s15  ;;  %s38_s12 = int_to_ptr.vmem [resolvable:$true] %s37_s12 }
  0x15   :  { %p595_p9 = scmp.lt.u32.totalorder %s591_s15, %s750_s4 }
  0x17   :  { %p597_p10 = pnand %p595_p9, %p592_p8 }
  0x19   :  { %600 = shalt.err (!%p597_p10)
}
  0x1a   :  { %s601_s20 = scalar_lea.vmem %s38_s12, 2048  ;;  %p606_p12 = scmp.lt.s32.totalorder %s38_s12, %s38_s12 }
  0x1b   :  { %p602_p11 = scmp.ne.s32.totalorder %s38_s12, %s601_s20  ;;  %p607_p13 = scmp.lt.s32.totalorder %s601_s20, %s601_s20 }
  0x1d   :  { %p608_p0 = por %p607_p13, %p606_p12 }
  0x1f   :  { %p609_p1 = pnand %p608_p0, %p602_p11 }
  0x21   :  { %612 = shalt.err (!%p609_p1)
}
  0x22   :  { %43 = dma.hbm_to_vmem [thread:$0]  %s750_s4, 2048, %s38_s12, [#allocation6], %s642_s7, %s642_s7, %s643_s8  }
  0x23   :  { %635 = dma.done.wait [#allocation3], 2048  }
  0x24   :  { %636 = vsyncadd [#allocation3], 4294965248 }
  0x25   :  { %637 = dma.done.wait [#allocation6], 2048  }
  0x26   :  { %638 = vsyncadd [#allocation6], 4294965248  ;;  %v645_v0 = vmov 0   ;;  %v52_v1 = vld [vmem:[%s746_s0] sm:$0xff]  ;;  %v69_v3 = vld [vmem:[%s747_s1 + $0x8] sm:$0xff]  ;;  %v54_v30 = vlaneseq  ;;  %vm70_vm0 = vcmask 130048  }
  0x27   :  { %568 = vset.pattern.permute.xlu0 %v645_v0  ;;  %v68_v2 = vld [vmem:[%s747_s1] sm:$0xff]  ;;  %v53_v4 = vld [vmem:[%s746_s0 + $0x8] sm:$0xff]  ;;  %v152_v6 = vld [vmem:[#allocation2] sm:$0xff]  ;;  %v646_v33 = vmov 0.0   ;;  %s647_s9 = smov [#allocation7]  }
  0x28   :  { %57 = vperm.xlu0 %568, %v52_v1   ;;  %v493_v5 = vpack.c.bf16 %v69_v3, %v68_v2  ;;  %v153_v7 = vld [vmem:[#allocation2 + $0x8] sm:$0xff]  ;;  %v154_v8 = vld [vmem:[#allocation2 + $0x10] sm:$0xff]  ;;  %v155_v10 = vld [vmem:[#allocation2 + $0x18] sm:$0xff]  ;;  %v55_v31 = vand.u32 127, %v54_v30  ;;  %s357_s10 = sshll.u32 %s647_s9, 4  ;;  %s358_s10 = int_to_ptr.vmem [resolvable:$true] %s357_s10 }
  0x29   :  { %v497_v9 = vpack.c.bf16 %v153_v7, %v152_v6  ;;  %v501_v11 = vpack.c.bf16 %v155_v10, %v154_v8  ;;  %v156_v12 = vld [vmem:[#allocation2 + $0x20] sm:$0xff]  ;;  %v157_v13 = vld [vmem:[#allocation2 + $0x28] sm:$0xff]  ;;  %v158_v15 = vld [vmem:[#allocation2 + $0x30] sm:$0xff]  ;;  %p618_p3 = scmp.lt.s32.totalorder %s358_s10, %s358_s10 }
  0x2a   :  { %494 = vmatprep.subr.bf16.mxu0 %v493_v5  ;;  %v505_v14 = vpack.c.bf16 %v157_v13, %v156_v12  ;;  %v159_v16 = vld [vmem:[#allocation2 + $0x38] sm:$0xff]  ;;  %v160_v18 = vld [vmem:[#allocation2 + $0x40] sm:$0xff]  ;;  %v161_v19 = vld [vmem:[#allocation2 + $0x48] sm:$0xff] }
  0x2b   :  { %496 = vmatpush3.bf16.msra.mxu0 %v493_v5  ;;  %498 = vmatprep.subr.bf16.mxu1 %v497_v9  ;;  %v509_v17 = vpack.c.bf16 %v159_v16, %v158_v15  ;;  %v513_v20 = vpack.c.bf16 %v161_v19, %v160_v18  ;;  %v162_v21 = vld [vmem:[#allocation2 + $0x50] sm:$0xff]  ;;  %v163_v22 = vld [vmem:[#allocation2 + $0x58] sm:$0xff]  ;;  %v164_v24 = vld [vmem:[#allocation2 + $0x60] sm:$0xff] }
  0x2c   :  { %60 = vperm.xlu0 %568, %v53_v4   ;;  %500 = vmatpush3.bf16.msra.mxu1 %v497_v9  ;;  %v517_v23 = vpack.c.bf16 %v163_v22, %v162_v21  ;;  %v165_v25 = vld [vmem:[#allocation2 + $0x68] sm:$0xff]  ;;  %v166_v27 = vld [vmem:[#allocation2 + $0x70] sm:$0xff]  ;;  %v167_v28 = vld [vmem:[#allocation2 + $0x78] sm:$0xff] }
  0x2d   :  { %502 = vmatprep.subr.bf16.mxu1 %v501_v11  ;;  %v521_v26 = vpack.c.bf16 %v165_v25, %v164_v24  ;;  %v525_v29 = vpack.c.bf16 %v167_v28, %v166_v27  ;;  %v252_v37 = vld [vmem:[#allocation5] sm:$0xff]  ;;  %v253_v38 = vld [vmem:[#allocation5 + $0x8] sm:$0xff]  ;;  %v254_v39 = vld [vmem:[#allocation5 + $0x10] sm:$0xff] }
  0x2e   :  { %v529_v40 = vpack.c.bf16 %v253_v38, %v252_v37  ;;  %v255_v41 = vld [vmem:[#allocation5 + $0x18] sm:$0xff]  ;;  %v256_v43 = vld [vmem:[#allocation5 + $0x20] sm:$0xff]  ;;  %v257_v44 = vld [vmem:[#allocation5 + $0x28] sm:$0xff] }
  0x2f   :  { %v533_v42 = vpack.c.bf16 %v255_v41, %v254_v39  ;;  %v537_v45 = vpack.c.bf16 %v257_v44, %v256_v43  ;;  %v258_v46 = vld [vmem:[#allocation5 + $0x30] sm:$0xff]  ;;  %v259_v47 = vld [vmem:[#allocation5 + $0x38] sm:$0xff]  ;;  %v260_v49 = vld [vmem:[#allocation5 + $0x40] sm:$0xff] }
  0x30   :  { %504 = vmatpush3.bf16.msra.mxu1 %v501_v11  ;;  %530 = vmatprep.subr.bf16.mxu0 %v529_v40  ;;  %v541_v48 = vpack.c.bf16 %v259_v47, %v258_v46  ;;  %v261_v50 = vld [vmem:[#allocation5 + $0x48] sm:$0xff]  ;;  %v262_v52 = vld [vmem:[#allocation5 + $0x50] sm:$0xff]  ;;  %v263_v53 = vld [vmem:[#allocation5 + $0x58] sm:$0xff] }
  0x31   :  { %506 = vmatprep.subr.bf16.mxu1 %v505_v14  ;;  %v545_v51 = vpack.c.bf16 %v261_v50, %v260_v49  ;;  %v549_v54 = vpack.c.bf16 %v263_v53, %v262_v52  ;;  %v264_v55 = vld [vmem:[#allocation5 + $0x60] sm:$0xff]  ;;  %v265_v56 = vld [vmem:[#allocation5 + $0x68] sm:$0xff]  ;;  %v266_v60 = vld [vmem:[#allocation5 + $0x70] sm:$0xff] }
  0x32   :  { %v553_v57 = vpack.c.bf16 %v265_v56, %v264_v55  ;;  %v267_v61 = vld [vmem:[#allocation5 + $0x78] sm:$0xff]  ;;  %v374_v63 = vld [vmem:[%s749_s3] ss:$0 sm:$0xff]  ;;  %s613_s3 = scalar_lea.vmem %s358_s10, 256 }
  0x33   :  { %v557_v62 = vpack.c.bf16 %v267_v61, %v266_v60  ;;  %v375_v6 = vld [vmem:[%s751_s5] ss:$0 sm:$0xff]  ;;  %p614_p2 = scmp.ne.s32.totalorder %s358_s10, %s613_s3  ;;  %p619_p4 = scmp.lt.s32.totalorder %s613_s3, %s613_s3 }
  0x34   :  { %508 = vmatpush3.bf16.msra.mxu1 %v505_v14 }
  0x35   :  { %510 = vmatprep.subr.bf16.mxu1 %v509_v17  ;;  %p620_p5 = por %p619_p4, %p618_p3 }
  0x37   :  { %p621_p6 = pnand %p620_p5, %p614_p2 }
  0x38   :  { %512 = vmatpush3.bf16.msra.mxu1 %v509_v17 }
  0x39   :  { %514 = vmatprep.subr.bf16.mxu1 %v513_v20 }
  0x3c   :  { %516 = vmatpush3.bf16.msra.mxu1 %v513_v20 }
  0x3d   :  { %518 = vmatprep.subr.bf16.mxu1 %v517_v23 }
  0x40   :  { %520 = vmatpush3.bf16.msra.mxu1 %v517_v23 }
  0x41   :  { %522 = vmatprep.subr.bf16.mxu1 %v521_v26 }
  0x44   :  { %524 = vmatpush3.bf16.msra.mxu1 %v521_v26 }
  0x45   :  { %526 = vmatprep.subr.bf16.mxu1 %v525_v29 }
  0x48   :  { %528 = vmatpush3.bf16.msra.mxu1 %v525_v29 }
  0xa7   :  { %v58_v32 = vpop.permute.xlu0 %57 }
  0xa8   :  { %vm62_vm1 = vcmp.eq.s32.totalorder %v58_v32, %v55_v31 }
  0xa9   :  { %v370_v34 = vsel %vm62_vm1, 1.0, %v646_v33 }
  0xaa   :  { %420 = vmatprep.mubr.msk.f32.mxu0 %vm70_vm0, %v370_v34 }
  0xab   :  { %v61_v35 = vpop.permute.xlu0 %60 }
  0xac   :  { %vm63_vm2 = vcmp.eq.s32.totalorder %v61_v35, %v55_v31 }
  0xad   :  { %v371_v36 = vsel %vm63_vm2, 1.0, %v646_v33 }
  0xae   :  { %421 = vmatmul.mubr.msk.f32.vlgmr.msra.gmra.mrb[0].mxu0 %vm70_vm0, %v371_v36 }
  0xaf   :  { %532 = vmatpush3.bf16.msra.mxu0 %v529_v40 }
  0xb0   :  { %534 = vmatprep.subr.bf16.mxu0 %v533_v42 }
  0xb3   :  { %536 = vmatpush3.bf16.msra.mxu0 %v533_v42 }
  0xb4   :  { %538 = vmatprep.subr.bf16.mxu0 %v537_v45 }
  0xb7   :  { %540 = vmatpush3.bf16.msra.mxu0 %v537_v45 }
  0xb8   :  { %542 = vmatprep.subr.bf16.mxu0 %v541_v48 }
  0xbb   :  { %544 = vmatpush3.bf16.msra.mxu0 %v541_v48 }
  0xbc   :  { %546 = vmatprep.subr.bf16.mxu0 %v545_v51 }
  0xbf   :  { %548 = vmatpush3.bf16.msra.mxu0 %v545_v51 }
  0xc0   :  { %550 = vmatprep.subr.bf16.mxu0 %v549_v54 }
  0xc3   :  { %552 = vmatpush3.bf16.msra.mxu0 %v549_v54 }
  0xc4   :  { %554 = vmatprep.subr.bf16.mxu0 %v553_v57 }
  0xc7   :  { %556 = vmatpush3.bf16.msra.mxu0 %v553_v57 }
  0xc8   :  { %558 = vmatprep.subr.bf16.mxu0 %v557_v62 }
  0xcb   :  { %560 = vmatpush3.bf16.msra.mxu0 %v557_v62 }
 0x181   :  { %v422_v58 = vpop.f32.mrb[0].mxu0 }
 0x182   :  { %v143_v59 = vpop.f32.mrb[1].mxu0 }
 0x183   :  { %455 = vmatprep.mubr.f32.mxu1 %v143_v59 }
 0x184   :  { %456 = vmatmul.mubr.f32.vlgmr.msra.gmra.mrb[0].mxu1 %v422_v58 }
 0x257   :  { %v457_v0 = vpop.f32.mrb[0].mxu1 }
 0x258   :  { %v247_v1 = vadd.f32 %v457_v0, %v374_v63  ;;  %v241_v2 = vpop.f32.mrb[1].mxu1 }
 0x259   :  { %v242_v3 = vadd.f32 %v374_v63, %v241_v2 }
 0x25a   :  { %v251_v5 = vmax.f32 %v247_v1, 0.0 }
 0x25b   :  { %v250_v4 = vmax.f32 %v242_v3, 0.0 }
 0x25d   :  { %490 = vmatprep.mubr.f32.mxu0 %v250_v4 }
 0x25e   :  { %491 = vmatmul.mubr.f32.vlgmr.msra.gmra.mrb[2].mxu0 %v251_v5 }
 0x331   :  { %v492_v7 = vpop.f32.mrb[2].mxu0 }
 0x332   :  { %v347_v8 = vadd.f32 %v492_v7, %v375_v6  ;;  %v341_v9 = vpop.f32.mrb[3].mxu0 }
 0x333   :  { %v342_v10 = vadd.f32 %v375_v6, %v341_v9 }
 0x334   :  { %351 = vst [vmem:[#allocation7 + $0x8] sm:$0xff] %v347_v8 }
 0x335   :  { %350 = vst [vmem:[#allocation7] sm:$0xff] %v342_v10 }
 0x336   :  { %624 = shalt.err (!%p621_p6)
}
 0x337   :  { %s625_s5 = scalar_lea.hbm %s752_s6, 256 }
 0x338   :  { %p626_p7 = scmp.ne.s32.totalorder %s752_s6, %s625_s5  ;;  %p629_p8 = scmp.lt.u32.totalorder %s625_s5, %s752_s6 }
 0x33a   :  { %p631_p9 = pnand %p629_p8, %p626_p7 }
 0x33c   :  { %634 = shalt.err (!%p631_p9)
}
 0x33d   :  { %363 = dma.vmem_to_hbm [thread:$0]  %s358_s10, 256, %s752_s6, [#allocation4], %s642_s7, %s642_s7, %s643_s8  }
 0x33e   :  { %639 = dma.done.wait [#allocation4], 256  }
 0x33f   :  { %640 = vsyncadd [#allocation4], 4294967040 }
 0x340   :  { %367 = vsyncpa [#allocation3], 1 }
 0x341   :  { %368 = vsyncpa [#allocation6], 1 }
 0x342   :  { %369 = vsyncpa [#allocation4], 1 }

</bundles_post_ra>
